<compile_context>
chip_gen: v5e
topology: v5e:2x2
jax: 0.10.0
libtpu: 0.0.40
codegen_flags: <defaults>
</compile_context>

<pallas_src>
import functools

import jax
import jax.numpy as jnp
from jax.experimental import pallas as pl
from jax.experimental.pallas import tpu as pltpu


def _rms_norm_kernel(x_ref, o_ref, *, denom, eps):
    # x_ref / o_ref block: (TN, F)
    x = x_ref[...].astype(jnp.float32)
    sum_sq = jnp.sum(x * x, axis=-1, keepdims=True)            # (TN, 1) XLU reduce
    inv = jax.lax.rsqrt(sum_sq / jnp.float32(denom) + jnp.float32(eps))  # EUP
    o_ref[...] = (x * inv).astype(o_ref.dtype)                 # 1 vmul / element


def _rms_norm_affine_kernel(x_ref, w_ref, o_ref, *, denom, eps):
    # x_ref / o_ref block: (TN, F);  w_ref block: (1, F)
    x = x_ref[...].astype(jnp.float32)
    sum_sq = jnp.sum(x * x, axis=-1, keepdims=True)            # (TN, 1)
    inv = jax.lax.rsqrt(sum_sq / jnp.float32(denom) + jnp.float32(eps))
    w = w_ref[...].astype(jnp.float32)                         # (1, F)
    o_ref[...] = ((x * inv) * w).astype(o_ref.dtype)


def _pick_rows_per_block(n_rows: int, feat: int) -> int:
    """Rows per grid step: target ~2 MiB f32 blocks, multiple of 8 sublanes."""
    target_bytes = 2 << 20
    rows = max(1, target_bytes // max(feat * 4, 1))
    rows = min(rows, 1024)
    rows = max(8, (rows // 8) * 8)
    if rows >= n_rows:
        return n_rows  # full-extent block dim (allowed even if not % 8)
    return rows


def per_irrep_layer_rms_norm(
    x_k: jax.Array,
    weight_k: jax.Array | None = None,
    *,
    eps: float = 1e-5,
    scaled_from_parent: bool = True,
    affine_from_parent: bool = True,
) -> jax.Array:
    """JAX/Pallas equivalent of PerIrrepRefLayerRMSNorm.forward.

    x_k:      (N, Dk, C_in)
    weight_k: (C_in,) or None
    """
    N, Dk, C_in = x_k.shape
    if N == 0 or Dk == 0 or C_in == 0:
        return x_k

    F = Dk * C_in
    denom = Dk * C_in if scaled_from_parent else C_in  # > 0 after early return
    use_affine = affine_from_parent and (weight_k is not None)

    # Flatten to a lane-dense 2-D layout (N, Dk*C_in).
    x2d = x_k.reshape(N, F)

    tn = _pick_rows_per_block(N, F)
    grid = (pl.cdiv(N, tn),)
    compiler_params = pltpu.CompilerParams(
        dimension_semantics=("parallel",),
        vmem_limit_bytes=32 * 1024 * 1024,
    )
    out_shape = jax.ShapeDtypeStruct((N, F), x_k.dtype)
    x_spec = pl.BlockSpec((tn, F), lambda i: (i, 0))
    o_spec = pl.BlockSpec((tn, F), lambda i: (i, 0))

    if use_affine:
        # weight broadcasts over Dk; tiling matches the flattened (Dk, C_in) order.
        w_flat = jnp.tile(weight_k.reshape(C_in), Dk).reshape(1, F).astype(x_k.dtype)
        kernel = functools.partial(_rms_norm_affine_kernel, denom=denom, eps=eps)
        out2d = pl.pallas_call(
            kernel,
            out_shape=out_shape,
            grid_spec=pltpu.PrefetchScalarGridSpec(
                num_scalar_prefetch=0,
                grid=grid,
                in_specs=[x_spec, pl.BlockSpec((1, F), lambda i: (0, 0))],
                out_specs=o_spec,
            ),
            compiler_params=compiler_params,
        )(x2d, w_flat)
    else:
        kernel = functools.partial(_rms_norm_kernel, denom=denom, eps=eps)
        out2d = pl.pallas_call(
            kernel,
            out_shape=out_shape,
            grid_spec=pltpu.PrefetchScalarGridSpec(
                num_scalar_prefetch=0,
                grid=grid,
                in_specs=[x_spec],
                out_specs=o_spec,
            ),
            compiler_params=compiler_params,
        )(x2d)

    return out2d.reshape(N, Dk, C_in)


def _reference(x_k, weight_k, *, eps, scaled, affine):
    N, Dk, C_in = x_k.shape
    sum_sq = jnp.sum(x_k.astype(jnp.float32) ** 2, axis=(1, 2))
    denom = Dk * C_in if scaled else C_in
    var = sum_sq / denom
    sigma = jnp.sqrt(var + eps)
    out = x_k.astype(jnp.float32) / sigma.reshape(N, 1, 1)
    if affine and weight_k is not None:
        out = out * weight_k.reshape(1, 1, C_in).astype(jnp.float32)
    return out.astype(x_k.dtype)


if __name__ == "__main__":
    # Small synthetic shapes consistent with the module's (N, Dk, C_in) input.
    N, Dk, C_in = 2, 3, 32
    eps = 1e-5

    key = jax.random.PRNGKey(0)
    kx, kw = jax.random.split(key)
    x_k = jax.random.normal(kx, (N, Dk, C_in), dtype=jnp.float32)
    weight_k = 1.0 + 0.1 * jax.random.normal(kw, (C_in,), dtype=jnp.float32)

    # Affine + scaled path.
    out = per_irrep_layer_rms_norm(
        x_k, weight_k, eps=eps, scaled_from_parent=True, affine_from_parent=True
    )
    out = jax.block_until_ready(out)
    ref = _reference(x_k, weight_k, eps=eps, scaled=True, affine=True)
    assert out.shape == x_k.shape and out.dtype == x_k.dtype
    assert jnp.allclose(out, ref, atol=1e-5, rtol=1e-5), "affine mismatch vs reference"

    # No-affine, unscaled path (exercises the weight-free kernel).
    out2 = per_irrep_layer_rms_norm(
        x_k, None, eps=eps, scaled_from_parent=False, affine_from_parent=False
    )
    out2 = jax.block_until_ready(out2)
    ref2 = _reference(x_k, None, eps=eps, scaled=False, affine=False)
    assert jnp.allclose(out2, ref2, atol=1e-5, rtol=1e-5), "no-affine mismatch vs reference"

    print("KERNEL_OK")
</pallas_src>

<mosaic_0001>
module attributes {stable_mosaic.version = 11 : i64} {
  func.func @_rms_norm_affine_kernel(%arg0: i32, %arg1: memref<2x96xf32, #tpu.memory_space<vmem>>, %arg2: memref<1x96xf32, #tpu.memory_space<vmem>>, %arg3: memref<2x96xf32, #tpu.memory_space<vmem>>) attributes {dimension_semantics = [#tpu.dimension_semantics<parallel>], iteration_bounds = array<i64: 1>, scalar_prefetch = 0 : i64, scratch_operands = 0 : i64, tpu.core_type = #tpu.core_type<tc>, window_params = [{transform_indices = @transform_0, window_bounds = array<i64: 2, 96>}, {pipeline_mode = #tpu.pipeline_mode<synchronous>, transform_indices = @transform_1, window_bounds = array<i64: 1, 96>}, {transform_indices = @transform_2, window_bounds = array<i64: 2, 96>}]} {
    %c0 = arith.constant 0 : index
    %c0_0 = arith.constant 0 : index
    %0 = vector.load %arg1[%c0, %c0_0] : memref<2x96xf32, #tpu.memory_space<vmem>>, vector<2x96xf32>
    %1 = arith.mulf %0, %0 : vector<2x96xf32>
    %cst = arith.constant dense<0.000000e+00> : vector<2xf32>
    %2 = vector.multi_reduction <add>, %1, %cst [1] : vector<2x96xf32> to vector<2xf32>
    %3 = vector.shape_cast %2 : vector<2xf32> to vector<2x1xf32>
    %cst_1 = arith.constant 9.600000e+01 : f32
    %4 = vector.broadcast %cst_1 : f32 to vector<2x1xf32>
    %5 = arith.divf %3, %4 : vector<2x1xf32>
    %cst_2 = arith.constant 9.99999974E-6 : f32
    %6 = vector.broadcast %cst_2 : f32 to vector<2x1xf32>
    %7 = arith.addf %5, %6 : vector<2x1xf32>
    %8 = math.rsqrt %7 : vector<2x1xf32>
    %c0_3 = arith.constant 0 : index
    %c0_4 = arith.constant 0 : index
    %9 = vector.load %arg2[%c0_3, %c0_4] : memref<1x96xf32, #tpu.memory_space<vmem>>, vector<1x96xf32>
    %10 = vector.broadcast %8 : vector<2x1xf32> to vector<2x96xf32>
    %11 = arith.mulf %0, %10 : vector<2x96xf32>
    %12 = vector.broadcast %9 : vector<1x96xf32> to vector<2x96xf32>
    %13 = arith.mulf %11, %12 : vector<2x96xf32>
    %c0_5 = arith.constant 0 : index
    %c0_6 = arith.constant 0 : index
    %14 = vector.load %arg3[%c0_5, %c0_6] : memref<2x96xf32, #tpu.memory_space<vmem>>, vector<2x96xf32>
    tpu.vector_store %arg3[%c0_5, %c0_6], %13 {strides = array<i32>} : memref<2x96xf32, #tpu.memory_space<vmem>>, vector<2x96xf32>,
    return
  }
  func.func @transform_0(%arg0: i32) -> (i32, i32) {
    %c0_i32 = arith.constant 0 : i32
    %c0_i32_0 = arith.constant 0 : i32
    return %arg0, %c0_i32 : i32, i32
  }
  func.func @transform_1(%arg0: i32) -> (i32, i32) {
    %c0_i32 = arith.constant 0 : i32
    %c0_i32_0 = arith.constant 0 : i32
    %c0_i32_1 = arith.constant 0 : i32
    return %c0_i32, %c0_i32_0 : i32, i32
  }
  func.func @transform_2(%arg0: i32) -> (i32, i32) {
    %c0_i32 = arith.constant 0 : i32
    %c0_i32_0 = arith.constant 0 : i32
    return %arg0, %c0_i32 : i32, i32
  }
}

</mosaic_0001>

<bundles_post_ra>
// kernel: tpu_custom_call.1
= control target key start
LH: loop header
LB: loop body
LE: loop exit
PB: predicated region body
PF: predicated region fallthrough
CT: control target
= control target key end

     0   :  { %7 = vsyncpa [#allocation3], 0  ;;  %s207_s0 = inlined_call_operand.hbm [shape: f32[2,96], index: 0, kind: input, shape index: {}]   ;;  %s208_s1 = inlined_call_operand.hbm [shape: f32[1,96], index: 1, kind: input, shape index: {}]   ;;  %s209_s2 = inlined_call_operand.hbm [shape: f32[2,96], index: 2, kind: output, shape index: {}]  }
   0x1   :  { %8 = vsyncpa [#allocation6], 0 }
   0x2   :  { %9 = vsyncpa [#allocation4], 0  ;;  %s15_s11 = sshll.u32 %s207_s0, 4  ;;  %s177_s12 = smov [#allocation2]   ;;  %s16_s11 = int_to_ptr.hbm [resolvable:$true] %s15_s11 }
   0x3   :  { %s17_s13 = sshll.u32 %s177_s12, 4  ;;  %s26_s16 = sshll.u32 %s208_s1, 4  ;;  %s18_s13 = int_to_ptr.vmem [resolvable:$true] %s17_s13  ;;  %s27_s16 = int_to_ptr.hbm [resolvable:$true] %s26_s16 }
   0x4   :  { %20 = dma.hbm_to_vmem [thread:$0]  %s16_s11, 32, %s18_s13, [#allocation3]  }
   0x5   :  { %s178_s17 = smov [#allocation5]  }
   0x6   :  { %s28_s18 = sshll.u32 %s178_s17, 4  ;;  %s29_s18 = int_to_ptr.vmem [resolvable:$true] %s28_s18 }
   0x7   :  { %31 = dma.hbm_to_vmem [thread:$0]  %s27_s16, 16, %s29_s18, [#allocation6]  }
   0x8   :  { %171 = dma.done.wait [#allocation3], 32  }
   0x9   :  { %172 = vsyncadd [#allocation3], 4294967264 }
   0xa   :  { %173 = dma.done.wait [#allocation6], 16  }
   0xb   :  { %174 = vsyncadd [#allocation6], 4294967280  ;;  %v40_v0 = vld [vmem:[#allocation2] sm:$0x3]  ;;  %vm42_vm0 = vcmask 779264   ;;  %v179_v3 = vmov 96.0  }
   0xc   :  { %v41_v1 = vmul.f32 %v40_v0, %v40_v0  ;;  %95 = vrcp.f32 %v179_v3  ;;  %v94_v19 = vld [vmem:[#allocation5] ss:$0 sm:$0xff]  ;;  %s180_s0 = smov [#allocation7]   ;;  %s79_s21 = sshll.u32 %s209_s2, 4  ;;  %s80_s21 = int_to_ptr.hbm [resolvable:$true] %s79_s21 }
   0xd   :  { %s77_s1 = sshll.u32 %s180_s0, 4  ;;  %s78_s1 = int_to_ptr.vmem [resolvable:$true] %s77_s1 }
   0xe   :  { %v43_v2 = vsel %vm42_vm0, %v41_v1, 0.0 }
   0xf   :  { %44 = vadd.xlane.f32.xlu0 %v43_v2 }
  0x12   :  { %v96_v4 = vpop.eup %95 }
  0x13   :  { %v47_v5 = vmul.f32 96.0, %v96_v4  ;;  %vm51_vm1 = vweird.f32 %v96_v4 }
  0x15   :  { %v48_v6 = vsub.f32 1.0, %v47_v5 }
  0x17   :  { %v49_v7 = vmul.f32 %v96_v4, %v48_v6 }
  0x19   :  { %v50_v8 = vadd.f32 %v96_v4, %v49_v7 }
  0x1b   :  { %v52_v9 = vsel %vm51_vm1, %v96_v4, %v50_v8 }
  0x82   :  { %v45_v10 = vpop.xlane.xlu0 %44 }
  0x83   :  { %v53_v11 = vmul.f32 %v52_v9, %v45_v10 }
  0x85   :  { %v54_v12 = vadd.f32 1e-05, %v53_v11 }
  0x87   :  { %97 = vrsqrt.f32 %v54_v12  ;;  %vm61_vm3 = vweird.f32 %v54_v12 }
  0x8d   :  { %v98_v13 = vpop.eup %97 }
  0x8e   :  { %v56_v14 = vmul.f32 %v98_v13, %v54_v12  ;;  %vm62_vm2 = vweird.f32 %v98_v13 }
  0x8f   :  { %vm63_vm4 = vmor %vm61_vm3, %vm62_vm2 }
  0x90   :  { %v57_v15 = vmul.f32 %v98_v13, %v56_v14 }
  0x92   :  { %v58_v16 = vmul.f32 0.5, %v57_v15 }
  0x94   :  { %v59_v17 = vsub.f32 1.5, %v58_v16 }
  0x96   :  { %v60_v18 = vmul.f32 %v98_v13, %v59_v17 }
  0x98   :  { %v64_v20 = vsel %vm63_vm4, %v98_v13, %v60_v18 }
  0x99   :  { %v66_v21 = vmul.f32 %v64_v20, %v40_v0 }
  0x9b   :  { %v70_v22 = vmul.f32 %v94_v19, %v66_v21 }
  0x9d   :  { %71 = vst.msk [vmem:[#allocation7] sm:$0x3] %vm42_vm0, %v70_v22 }
  0x9e   :  { %82 = dma.vmem_to_hbm [thread:$0]  %s78_s1, 32, %s80_s21, [#allocation4]  }
  0x9f   :  { %175 = dma.done.wait [#allocation4], 32  }
  0xa0   :  { %176 = vsyncadd [#allocation4], 4294967264 }
  0xa1   :  { %87 = vsyncpa [#allocation3], 1 }
  0xa2   :  { %88 = vsyncpa [#allocation6], 1 }
  0xa3   :  { %89 = vsyncpa [#allocation4], 1 }

</bundles_post_ra>
